<compile_context>
chip_gen: v7x
topology: tpu7x:2x2x1
jax: 0.10.0
libtpu: 0.0.40
codegen_flags: <defaults>
</compile_context>

<pallas_src>
import math
from functools import partial

import jax
import jax.numpy as jnp
import numpy as np
from jax.experimental import pallas as pl
from jax.experimental.pallas import tpu as pltpu

LANE = 128  # lane width for the lane-dense packed slabs


# ---------------------------------------------------------------------------
# Helpers
# ---------------------------------------------------------------------------
def _layer_norm(x, gamma, beta, eps=1e-5):
    mean = jnp.mean(x, axis=-1, keepdims=True)
    var = jnp.mean((x - mean) ** 2, axis=-1, keepdims=True)
    return (x - mean) * jax.lax.rsqrt(var + eps) * gamma + beta


# ---------------------------------------------------------------------------
# Kernel
# ---------------------------------------------------------------------------
def transformer_layer_kernel(x_ref, wd_ref, wdi_ref, bn_ref, out_ref):
    x = x_ref[...]                                    # (S, D) f32
    S, D = x.shape
    Di = wd_ref.shape[1] // 4                         # wd = [wqkv | w1]

    # ---- unpack packed weight / bias / norm slabs (static lane slices) -----
    wd = wd_ref[...]                                  # (D, 4*Di)
    wqkv = wd[:, : 3 * Di]                            # (D, 3*Di)
    w1 = wd[:, 3 * Di:]                               # (D, Di)

    wdi = wdi_ref[...]                                # (Di, 2*D)
    wo = wdi[:, :D]                                   # (Di, D)
    w2 = wdi[:, D:]                                   # (Di, D)

    bn = bn_ref[...]                                  # (2, LANE)
    bqkv = bn[0:1, 0:3 * Di]                          # (1, 3*Di)
    bo = bn[0:1, 3 * Di:3 * Di + D]                   # (1, D)
    b1 = bn[0:1, 3 * Di + D:4 * Di + D]               # (1, Di)
    b2 = bn[0:1, 4 * Di + D:4 * Di + 2 * D]           # (1, D)
    g1 = bn[1:2, 0:D]
    be1 = bn[1:2, D:2 * D]
    g2 = bn[1:2, 2 * D:3 * D]
    be2 = bn[1:2, 3 * D:4 * D]

    # ---- fused Q/K/V projection: one (S,D)x(D,3*Di) MXU matmul -------------
    qkv = jnp.dot(x, wqkv, preferred_element_type=jnp.float32) + bqkv
    q = qkv[:, 0 * Di:1 * Di]
    k = qkv[:, 1 * Di:2 * Di]
    v = qkv[:, 2 * Di:3 * Di]

    # ---- scaled dot-product attention (single head) -------------------------
    scores = jnp.dot(q, k.T, preferred_element_type=jnp.float32)
    scores = scores * jnp.float32(1.0 / math.sqrt(Di))
    scores = scores - jnp.max(scores, axis=-1, keepdims=True)
    e = jnp.exp(scores)
    inv_denom = pl.reciprocal(jnp.sum(e, axis=-1, keepdims=True))  # exact
    attn = e * inv_denom                                           # (S, S)

    attn_out = jnp.dot(attn, v, preferred_element_type=jnp.float32)
    proj = jnp.dot(attn_out, wo, preferred_element_type=jnp.float32) + bo

    x1 = _layer_norm(x + proj, g1, be1)

    # ---- FFN: Linear -> ReLU -> Linear --------------------------------------
    h = jnp.dot(x1, w1, preferred_element_type=jnp.float32) + b1
    h = jnp.maximum(h, 0.0)
    ffn = jnp.dot(h, w2, preferred_element_type=jnp.float32) + b2

    x2 = _layer_norm(x1 + ffn, g2, be2)

    # ---- single lane-dense output slab: [x_out | attn | 0-pad] --------------
    pad = out_ref.shape[-1] - (D + S)
    out_ref[...] = jnp.concatenate(
        [x2, attn, jnp.zeros((S, pad), jnp.float32)], axis=-1)


# ---------------------------------------------------------------------------
# Wrapper
# ---------------------------------------------------------------------------
@jax.jit
def transformer_layer_pallas(x, params):
    (wq, bq, wk, bk, wv, bv, wo, bo,
     g1, be1, w1, b1, w2, b2, g2, be2) = params

    S, D = x.shape
    Di = wq.shape[1]

    # Pack weights / biases / norm params into a few lane-dense slabs
    # (one DMA each; no per-step re-streaming since there is no grid).
    wd = jnp.concatenate([wq, wk, wv, w1], axis=1)            # (D, 4*Di)
    wdi = jnp.concatenate([wo, w2], axis=1)                   # (Di, 2*D)

    bias_row = jnp.concatenate([bq, bk, bv, bo, b1, b2], axis=1)   # (1, 4Di+2D)
    norm_row = jnp.concatenate([g1, be1, g2, be2], axis=1)         # (1, 4D)

    def _pad_row(r):
        return jnp.pad(r, ((0, 0), (0, LANE - r.shape[1])))

    bn = jnp.concatenate([_pad_row(bias_row), _pad_row(norm_row)], axis=0)

    out_shape = jax.ShapeDtypeStruct((S, LANE), jnp.float32)

    vmem = pl.BlockSpec(memory_space=pltpu.MemorySpace.VMEM)

    out = pl.pallas_call(
        transformer_layer_kernel,
        out_shape=out_shape,
        in_specs=[vmem, vmem, vmem, vmem],
        out_specs=vmem,
        # Single invocation, no grid: all operands resident in VMEM.
        # (v7x note: with one tiny layer there is no parallel axis to shard
        #  across the two TensorCores; at larger seq/heads a leading
        #  "parallel" grid axis over sequence blocks would recover the 2nd TC.)
    )(x, wd, wdi, bn)

    return out[:, :D], out[:, D:D + S]


# ---------------------------------------------------------------------------
# Pure-JAX reference (matches the PyTorch forward semantics)
# ---------------------------------------------------------------------------
def transformer_layer_reference(x, params):
    (wq, bq, wk, bk, wv, bv, wo, bo,
     g1, be1, w1, b1, w2, b2, g2, be2) = params
    q = x @ wq + bq
    k = x @ wk + bk
    v = x @ wv + bv
    s = (q @ k.T) / np.sqrt(k.shape[-1])
    a = jax.nn.softmax(s, axis=-1)
    x1 = _layer_norm(x + (a @ v) @ wo + bo, g1, be1)
    h = jax.nn.relu(x1 @ w1 + b1)
    x2 = _layer_norm(x1 + h @ w2 + b2, g2, be2)
    return x2, a


# ---------------------------------------------------------------------------
# Deterministic parameter init (PyTorch nn.Linear-style uniform init)
# ---------------------------------------------------------------------------
def init_params(key, d_model, d_internal):
    keys = iter(jax.random.split(key, 16))

    def u(shape, fan_in):
        bound = 1.0 / np.sqrt(fan_in)
        return jax.random.uniform(next(keys), shape, jnp.float32, -bound, bound)

    D, Di = d_model, d_internal
    return (
        u((D, Di), D), u((1, Di), D),     # attention_linear_q
        u((D, Di), D), u((1, Di), D),     # attention_linear_k
        u((D, Di), D), u((1, Di), D),     # attention_linear_v
        u((Di, D), Di), u((1, D), Di),    # attention_output
        jnp.ones((1, D), jnp.float32), jnp.zeros((1, D), jnp.float32),   # norm1
        u((D, Di), D), u((1, Di), D),     # ffn linear 1
        u((Di, D), Di), u((1, D), Di),    # ffn linear 2
        jnp.ones((1, D), jnp.float32), jnp.zeros((1, D), jnp.float32),   # norm2
    )


# ---------------------------------------------------------------------------
if __name__ == "__main__":
    d_model = 32
    d_internal = 16
    seq_len = 8

    key = jax.random.PRNGKey(0)
    k_x, k_p = jax.random.split(key)

    x = jax.random.normal(k_x, (seq_len, d_model), jnp.float32)
    params = init_params(k_p, d_model, d_internal)

    x_out, attn = transformer_layer_pallas(x, params)
    jax.block_until_ready(x_out)
    jax.block_until_ready(attn)

    # Correctness check against the pure-JAX reference.
    ref_x, ref_attn = transformer_layer_reference(x, params)
    np.testing.assert_allclose(np.asarray(x_out), np.asarray(ref_x),
                               rtol=1e-4, atol=1e-4)
    np.testing.assert_allclose(np.asarray(attn), np.asarray(ref_attn),
                               rtol=1e-4, atol=1e-4)

    print("KERNEL_OK")
</pallas_src>

<mosaic_0001>
module attributes {stable_mosaic.version = 11 : i64} {
  func.func @transformer_layer_kernel(%arg0: memref<8x32xf32, #tpu.memory_space<vmem>>, %arg1: memref<32x64xf32, #tpu.memory_space<vmem>>, %arg2: memref<16x64xf32, #tpu.memory_space<vmem>>, %arg3: memref<2x128xf32, #tpu.memory_space<vmem>>, %arg4: memref<8x128xf32, #tpu.memory_space<vmem>>) attributes {dimension_semantics = [], scalar_prefetch = 0 : i64, scratch_operands = 0 : i64, tpu.core_type = #tpu.core_type<tc>} {
    %c0 = arith.constant 0 : index
    %c0_0 = arith.constant 0 : index
    %0 = vector.load %arg0[%c0, %c0_0] : memref<8x32xf32, #tpu.memory_space<vmem>>, vector<8x32xf32>
    %c0_1 = arith.constant 0 : index
    %c0_2 = arith.constant 0 : index
    %1 = vector.load %arg1[%c0_1, %c0_2] : memref<32x64xf32, #tpu.memory_space<vmem>>, vector<32x64xf32>
    %2 = vector.extract_strided_slice %1 {offsets = [0, 0], sizes = [32, 48], strides = [1, 1]} : vector<32x64xf32> to vector<32x48xf32>
    %3 = vector.extract_strided_slice %1 {offsets = [0, 48], sizes = [32, 16], strides = [1, 1]} : vector<32x64xf32> to vector<32x16xf32>
    %c0_3 = arith.constant 0 : index
    %c0_4 = arith.constant 0 : index
    %4 = vector.load %arg2[%c0_3, %c0_4] : memref<16x64xf32, #tpu.memory_space<vmem>>, vector<16x64xf32>
    %5 = vector.extract_strided_slice %4 {offsets = [0, 0], sizes = [16, 32], strides = [1, 1]} : vector<16x64xf32> to vector<16x32xf32>
    %6 = vector.extract_strided_slice %4 {offsets = [0, 32], sizes = [16, 32], strides = [1, 1]} : vector<16x64xf32> to vector<16x32xf32>
    %c0_5 = arith.constant 0 : index
    %c0_6 = arith.constant 0 : index
    %7 = vector.load %arg3[%c0_5, %c0_6] : memref<2x128xf32, #tpu.memory_space<vmem>>, vector<2x128xf32>
    %8 = vector.extract_strided_slice %7 {offsets = [0, 0], sizes = [1, 48], strides = [1, 1]} : vector<2x128xf32> to vector<1x48xf32>
    %9 = vector.extract_strided_slice %7 {offsets = [0, 48], sizes = [1, 32], strides = [1, 1]} : vector<2x128xf32> to vector<1x32xf32>
    %10 = vector.extract_strided_slice %7 {offsets = [0, 80], sizes = [1, 16], strides = [1, 1]} : vector<2x128xf32> to vector<1x16xf32>
    %11 = vector.extract_strided_slice %7 {offsets = [0, 96], sizes = [1, 32], strides = [1, 1]} : vector<2x128xf32> to vector<1x32xf32>
    %12 = vector.extract_strided_slice %7 {offsets = [1, 0], sizes = [1, 32], strides = [1, 1]} : vector<2x128xf32> to vector<1x32xf32>
    %13 = vector.extract_strided_slice %7 {offsets = [1, 32], sizes = [1, 32], strides = [1, 1]} : vector<2x128xf32> to vector<1x32xf32>
    %14 = vector.extract_strided_slice %7 {offsets = [1, 64], sizes = [1, 32], strides = [1, 1]} : vector<2x128xf32> to vector<1x32xf32>
    %15 = vector.extract_strided_slice %7 {offsets = [1, 96], sizes = [1, 32], strides = [1, 1]} : vector<2x128xf32> to vector<1x32xf32>
    %cst = arith.constant dense<0.000000e+00> : vector<8x48xf32>
    %16 = tpu.matmul %0, %2, %cst {dimension_numbers = #tpu.dot_dimension_numbers<[1], [0], [0], [1], [0, 0, 1, 1], [], []>} : vector<8x32xf32>, vector<32x48xf32>, vector<8x48xf32> -> vector<8x48xf32>
    %17 = vector.broadcast %8 : vector<1x48xf32> to vector<8x48xf32>
    %18 = arith.addf %16, %17 : vector<8x48xf32>
    %19 = vector.extract_strided_slice %18 {offsets = [0, 0], sizes = [8, 16], strides = [1, 1]} : vector<8x48xf32> to vector<8x16xf32>
    %20 = vector.extract_strided_slice %18 {offsets = [0, 16], sizes = [8, 16], strides = [1, 1]} : vector<8x48xf32> to vector<8x16xf32>
    %21 = vector.extract_strided_slice %18 {offsets = [0, 32], sizes = [8, 16], strides = [1, 1]} : vector<8x48xf32> to vector<8x16xf32>
    %22 = tpu.transpose %20, [1, 0] : vector<8x16xf32> -> vector<16x8xf32>
    %cst_7 = arith.constant dense<0.000000e+00> : vector<8x8xf32>
    %23 = tpu.matmul %19, %22, %cst_7 {dimension_numbers = #tpu.dot_dimension_numbers<[1], [0], [0], [1], [0, 0, 1, 1], [], []>} : vector<8x16xf32>, vector<16x8xf32>, vector<8x8xf32> -> vector<8x8xf32>
    %cst_8 = arith.constant 2.500000e-01 : f32
    %24 = vector.broadcast %cst_8 : f32 to vector<8x8xf32>
    %25 = arith.mulf %23, %24 : vector<8x8xf32>
    %cst_9 = arith.constant dense<0xFF800000> : vector<8xf32>
    %26 = vector.multi_reduction <maximumf>, %25, %cst_9 [1] : vector<8x8xf32> to vector<8xf32>
    %27 = vector.shape_cast %26 : vector<8xf32> to vector<8x1xf32>
    %28 = vector.broadcast %27 : vector<8x1xf32> to vector<8x8xf32>
    %29 = arith.subf %25, %28 : vector<8x8xf32>
    %30 = math.exp %29 : vector<8x8xf32>
    %cst_10 = arith.constant dense<0.000000e+00> : vector<8xf32>
    %31 = vector.multi_reduction <add>, %30, %cst_10 [1] : vector<8x8xf32> to vector<8xf32>
    %32 = vector.shape_cast %31 : vector<8xf32> to vector<8x1xf32>
    %33 = tpu.reciprocal %32 : vector<8x1xf32> -> vector<8x1xf32>
    %34 = vector.broadcast %33 : vector<8x1xf32> to vector<8x8xf32>
    %35 = arith.mulf %30, %34 : vector<8x8xf32>
    %cst_11 = arith.constant dense<0.000000e+00> : vector<8x16xf32>
    %36 = tpu.matmul %35, %21, %cst_11 {dimension_numbers = #tpu.dot_dimension_numbers<[1], [0], [0], [1], [0, 0, 1, 1], [], []>} : vector<8x8xf32>, vector<8x16xf32>, vector<8x16xf32> -> vector<8x16xf32>
    %cst_12 = arith.constant dense<0.000000e+00> : vector<8x32xf32>
    %37 = tpu.matmul %36, %5, %cst_12 {dimension_numbers = #tpu.dot_dimension_numbers<[1], [0], [0], [1], [0, 0, 1, 1], [], []>} : vector<8x16xf32>, vector<16x32xf32>, vector<8x32xf32> -> vector<8x32xf32>
    %38 = vector.broadcast %9 : vector<1x32xf32> to vector<8x32xf32>
    %39 = arith.addf %37, %38 : vector<8x32xf32>
    %40 = arith.addf %0, %39 : vector<8x32xf32>
    %cst_13 = arith.constant dense<0.000000e+00> : vector<8xf32>
    %41 = vector.multi_reduction <add>, %40, %cst_13 [1] : vector<8x32xf32> to vector<8xf32>
    %42 = vector.shape_cast %41 : vector<8xf32> to vector<8x1xf32>
    %cst_14 = arith.constant 3.200000e+01 : f32
    %43 = vector.broadcast %cst_14 : f32 to vector<8x1xf32>
    %44 = arith.divf %42, %43 : vector<8x1xf32>
    %45 = vector.broadcast %44 : vector<8x1xf32> to vector<8x32xf32>
    %46 = arith.subf %40, %45 : vector<8x32xf32>
    %47 = arith.mulf %46, %46 : vector<8x32xf32>
    %cst_15 = arith.constant dense<0.000000e+00> : vector<8xf32>
    %48 = vector.multi_reduction <add>, %47, %cst_15 [1] : vector<8x32xf32> to vector<8xf32>
    %49 = vector.shape_cast %48 : vector<8xf32> to vector<8x1xf32>
    %cst_16 = arith.constant 3.200000e+01 : f32
    %50 = vector.broadcast %cst_16 : f32 to vector<8x1xf32>
    %51 = arith.divf %49, %50 : vector<8x1xf32>
    %52 = vector.broadcast %44 : vector<8x1xf32> to vector<8x32xf32>
    %53 = arith.subf %40, %52 : vector<8x32xf32>
    %cst_17 = arith.constant 9.99999974E-6 : f32
    %54 = vector.broadcast %cst_17 : f32 to vector<8x1xf32>
    %55 = arith.addf %51, %54 : vector<8x1xf32>
    %56 = math.rsqrt %55 : vector<8x1xf32>
    %57 = vector.broadcast %56 : vector<8x1xf32> to vector<8x32xf32>
    %58 = arith.mulf %53, %57 : vector<8x32xf32>
    %59 = vector.broadcast %12 : vector<1x32xf32> to vector<8x32xf32>
    %60 = arith.mulf %58, %59 : vector<8x32xf32>
    %61 = vector.broadcast %13 : vector<1x32xf32> to vector<8x32xf32>
    %62 = arith.addf %60, %61 : vector<8x32xf32>
    %cst_18 = arith.constant dense<0.000000e+00> : vector<8x16xf32>
    %63 = tpu.matmul %62, %3, %cst_18 {dimension_numbers = #tpu.dot_dimension_numbers<[1], [0], [0], [1], [0, 0, 1, 1], [], []>} : vector<8x32xf32>, vector<32x16xf32>, vector<8x16xf32> -> vector<8x16xf32>
    %64 = vector.broadcast %10 : vector<1x16xf32> to vector<8x16xf32>
    %65 = arith.addf %63, %64 : vector<8x16xf32>
    %cst_19 = arith.constant 0.000000e+00 : f32
    %66 = vector.broadcast %cst_19 : f32 to vector<8x16xf32>
    %67 = arith.maximumf %65, %66 : vector<8x16xf32>
    %cst_20 = arith.constant dense<0.000000e+00> : vector<8x32xf32>
    %68 = tpu.matmul %67, %6, %cst_20 {dimension_numbers = #tpu.dot_dimension_numbers<[1], [0], [0], [1], [0, 0, 1, 1], [], []>} : vector<8x16xf32>, vector<16x32xf32>, vector<8x32xf32> -> vector<8x32xf32>
    %69 = vector.broadcast %11 : vector<1x32xf32> to vector<8x32xf32>
    %70 = arith.addf %68, %69 : vector<8x32xf32>
    %71 = arith.addf %62, %70 : vector<8x32xf32>
    %cst_21 = arith.constant dense<0.000000e+00> : vector<8xf32>
    %72 = vector.multi_reduction <add>, %71, %cst_21 [1] : vector<8x32xf32> to vector<8xf32>
    %73 = vector.shape_cast %72 : vector<8xf32> to vector<8x1xf32>
    %cst_22 = arith.constant 3.200000e+01 : f32
    %74 = vector.broadcast %cst_22 : f32 to vector<8x1xf32>
    %75 = arith.divf %73, %74 : vector<8x1xf32>
    %76 = vector.broadcast %75 : vector<8x1xf32> to vector<8x32xf32>
    %77 = arith.subf %71, %76 : vector<8x32xf32>
    %78 = arith.mulf %77, %77 : vector<8x32xf32>
    %cst_23 = arith.constant dense<0.000000e+00> : vector<8xf32>
    %79 = vector.multi_reduction <add>, %78, %cst_23 [1] : vector<8x32xf32> to vector<8xf32>
    %80 = vector.shape_cast %79 : vector<8xf32> to vector<8x1xf32>
    %cst_24 = arith.constant 3.200000e+01 : f32
    %81 = vector.broadcast %cst_24 : f32 to vector<8x1xf32>
    %82 = arith.divf %80, %81 : vector<8x1xf32>
    %83 = vector.broadcast %75 : vector<8x1xf32> to vector<8x32xf32>
    %84 = arith.subf %71, %83 : vector<8x32xf32>
    %cst_25 = arith.constant 9.99999974E-6 : f32
    %85 = vector.broadcast %cst_25 : f32 to vector<8x1xf32>
    %86 = arith.addf %82, %85 : vector<8x1xf32>
    %87 = math.rsqrt %86 : vector<8x1xf32>
    %88 = vector.broadcast %87 : vector<8x1xf32> to vector<8x32xf32>
    %89 = arith.mulf %84, %88 : vector<8x32xf32>
    %90 = vector.broadcast %14 : vector<1x32xf32> to vector<8x32xf32>
    %91 = arith.mulf %89, %90 : vector<8x32xf32>
    %92 = vector.broadcast %15 : vector<1x32xf32> to vector<8x32xf32>
    %93 = arith.addf %91, %92 : vector<8x32xf32>
    %cst_26 = arith.constant 0.000000e+00 : f32
    %94 = vector.broadcast %cst_26 : f32 to vector<8x88xf32>
    %95 = tpu.concatenate %93, %35, %94 in 1 : vector<8x32xf32>, vector<8x8xf32>, vector<8x88xf32> -> vector<8x128xf32>
    %c0_27 = arith.constant 0 : index
    %c0_28 = arith.constant 0 : index
    %96 = vector.load %arg4[%c0_27, %c0_28] : memref<8x128xf32, #tpu.memory_space<vmem>>, vector<8x128xf32>
    tpu.vector_store %arg4[%c0_27, %c0_28], %95 {strides = array<i32>} : memref<8x128xf32, #tpu.memory_space<vmem>>, vector<8x128xf32>,
    return
  }
}

</mosaic_0001>

<bundles_post_ra>
// kernel: transformer_layer_pallas.1
= control target key start
LH: loop header
LB: loop body
LE: loop exit
PB: predicated region body
PF: predicated region fallthrough
CT: control target
= control target key end

     0   :  { %v705_v0 = vmov 0.0|0.0   ;;  %vm706_vm0 = vmmov 0   ;;  %v707_v4 = vmov 0.0   ;;  %vm29_vm1 = vcmask 261120   ;;  %s711_s30 = smov 48   ;;  %s712_s5 = smov 32   ;;  %s840_s1 = inlined_call_operand.vmem [shape: f32[32,64], index: 1, kind: input, shape index: {}]   ;;  %s841_s0 = inlined_call_operand.vmem [shape: f32[8,32], index: 0, kind: input, shape index: {}]   ;;  %s842_s3 = inlined_call_operand.vmem [shape: f32[2,128], index: 3, kind: input, shape index: {}]   ;;  %s843_s2 = inlined_call_operand.vmem [shape: f32[16,64], index: 2, kind: input, shape index: {}]   ;;  %s844_s4 = inlined_call_operand.vmem [shape: f32[8,128], index: 4, kind: output, shape index: {}]  }
   0x1   :  { %655 = vmatprep.subr.bf16.mxu0 %v705_v0  ;;  %v743_v1 = vld [vmem:[%s840_s1] sm:$0xff]  ;;  %v748_v2 = vld [vmem:[%s840_s1 + $0x8] sm:$0xff]  ;;  %v753_v3 = vld [vmem:[%s840_s1 + $0x10] sm:$0xff]  ;;  %617 = vmatprep.mubr.msk.f32.mxu0 %vm706_vm0, %v707_v4  ;;  %v25_v10 = vlaneseq  ;;  %vm106_vm2 = vcmask 130048   ;;  %vm182_vm3 = vcmask 64512   ;;  %s713_s6 = smov 64  }
   0x2   :  { %v682_v5 = vpack.i.bf16 %v748_v2, %v743_v1  ;;  %v656_v6 = vpack.c.bf16 %v748_v2, %v743_v1  ;;  %v764_v7 = vld [vmem:[%s840_s1 + $0x18] sm:$0xff]  ;;  %620 = vmatprep.subr.mxu1 %v707_v4  ;;  %622 = vmatprep.mubr.msk.f32.mxu1 %vm706_vm0, %v707_v4  ;;  %v775_v9 = vld [vmem:[%s841_s0] sm:$0xff]  ;;  %s708_s0 = smov 112   ;;  %v23_v29 = vld [vmem:[%s843_s2 + $0x8] sm:$0xff]  ;;  %vm575_vm4 = vcmask 326656  }
   0x3   :  { %v659_v8 = vpack.c.bf16 %v764_v7, %v753_v3  ;;  %v782_v11 = vshrl.u32 %v25_v10, 7  ;;  %v24_v13 = vld [vmem:[%s842_s3] sm:$0x3]  ;;  %s709_s3 = smov 96   ;;  %v687_v54 = vpack.i.bf16 %v764_v7, %v753_v3 }
   0x4   :  { %657 = vmatpush3.bf16.msra.mxu0 %v656_v6  ;;  %v22_v28 = vld [vmem:[%s843_s2] sm:$0xff]  ;;  %s710_s2 = smov 80  }
   0x5   :  { %658 = vmatprep.subr.bf16.mxu0 %v705_v0  ;;  %v27_v12 = vsub.s32 0, %v782_v11  ;;  %v662_v30 = vpack.c.bf16 %v23_v29, %v22_v28  ;;  %v364_v43 = vsub.s32 1, %v782_v11  ;;  %v692_v55 = vpack.i.bf16 %v23_v29, %v22_v28 }
   0x7   :  { %v788_v14 = vrot.slane %v24_v13, %v27_v12  ;;  %v365_v47 = vrot.slane %v24_v13, %v364_v43 }
   0x8   :  { %660 = vmatpush3.bf16.msra.mxu0 %v659_v8 }
   0x9   :  { %661 = vmatprep.subr.bf16.mxu0 %v705_v0 }
   0xb   :  { %618 = vmatmul.mubr.msk.f32.vlgmr.msra.gmra.mrb[0].mxu0 %vm29_vm1, %v775_v9 }
   0xc   :  { %634 = vmatprep.mubr.msk.f32.mxu0 %vm706_vm0, %v707_v4  ;;  %663 = vmatpush3.bf16.msra.mxu0 %v662_v30 }
   0xd   :  { %670 = vmatprep.subr.bf16.mxu0 %v705_v0 }
  0xde   :  { %v99_v15 = vpop.f32.mrb[0].mxu0 }
  0xdf   :  { %v100_v16 = vadd.f32 %v99_v15, %v788_v14  ;;  %v619_v17 = vpop.f32.mrb[1].mxu0 }
  0xe1   :  { %104 = vrot.lane.b32.xlu0 %v100_v16, %s708_s0 }
 0x153   :  { %v105_v18 = vpop.permute.xlu0 %104 }
 0x154   :  { %621 = vmatpush3.xpose.msk.msra.mxu1 %vm106_vm2, %v105_v18 }
 0x155   :  { %625 = vmatprep.subr.mxu1 %v707_v4 }
 0x157   :  { %623 = vmatmul.mubr.msk.f32.vlgmr.msra.gmra.mrb[0].mxu1 %vm106_vm2, %v100_v16 }
 0x158   :  { %627 = vmatprep.mubr.msk.f32.mxu1 %vm706_vm0, %v707_v4 }
 0x22a   :  { %v177_v19 = vpop.f32.mrb[0].mxu1 }
 0x22b   :  { %v181_v20 = vmul.f32 0.25, %v177_v19  ;;  %v624_v21 = vpop.f32.mrb[1].mxu1 }
 0x22d   :  { %v183_v22 = vsel %vm182_vm3, %v181_v20, -inf }
 0x22e   :  { %184 = vmax.xlane.f32.xlu0 %v183_v22 }
 0x244   :  { %683 = vrot.lane.b32.xlu0 %v682_v5, %s710_s2 }
 0x2bb   :  { %v185_v23 = vpop.xlane.xlu0 %184 }
 0x2bc   :  { %v186_v24 = vsub.f32 %v181_v20, %v185_v23 }
 0x2be   :  { %v187_v25 = vmul.f32 1.442695, %v186_v24 }
 0x2bf   :  { %v684_v44 = vpop.permute.xlu0 %683 }
 0x2c0   :  { %697 = vpow2.f32 %v187_v25  ;;  %v686_v45 = vunpack.i.h.bf16 %v684_v44  ;;  %v685_v46 = vunpack.i.l.bf16 %v684_v44 }
 0x2c2   :  { %v665_v48 = vpack.c.bf16 %v686_v45, %v685_v46 }
 0x2ca   :  { %v698_v26 = vpop.eup %697 }
 0x2cb   :  { %v189_v27 = vsel %vm182_vm3, %v698_v26, 0.0 }
 0x2cc   :  { %190 = vadd.xlane.f32.xlu1 %v189_v27 }
 0x2dd   :  { %194 = vrot.lane.b32.xlu1 %v100_v16, %s709_s3 }
 0x2e1   :  { %271 = vrot.lane.b32.xlu1 %v788_v14, %s710_s2 }
 0x359   :  { %v191_v31 = vpop.xlane.xlu1 %190 }
 0x35a   :  { %699 = vrcp.f32 %v191_v31 }
 0x35d   :  { %v195_v32 = vpop.permute.xlu1 %194 }
 0x35e   :  { %626 = vmatpush3.msra.mxu1 %v195_v32 }
 0x35f   :  { %664 = vmatprep.subr.bf16.mxu1 %v705_v0 }
 0x361   :  { %v272_v37 = vpop.permute.xlu1 %271 }
 0x364   :  { %v700_v33 = vpop.eup %699 }
 0x365   :  { %v807_v34 = vmul.f32 %v700_v33, %v698_v26 }
 0x367   :  { %628 = vmatmul.mubr.msk.f32.vlgmr.msra.gmra.mrb[2].mxu1 %vm182_vm3, %v807_v34 }
 0x368   :  { %645 = vmatprep.mubr.msk.f32.mxu1 %vm706_vm0, %v707_v4  ;;  %666 = vmatpush3.bf16.msra.mxu1 %v665_v48 }
 0x369   :  { %667 = vmatprep.subr.bf16.mxu1 %v705_v0 }
 0x43a   :  { %v266_v35 = vpop.f32.mrb[2].mxu1 }
 0x43b   :  { %v629_v36 = vpop.f32.mrb[3].mxu1  ;;  %635 = vmatmul.mubr.msk.f32.vlgmr.msra.gmra.mrb[2].mxu0 %vm106_vm2, %v266_v35 }
 0x43c   :  { %652 = vmatprep.mubr.msk.f32.mxu0 %vm706_vm0, %v707_v4 }
 0x50e   :  { %v343_v38 = vpop.f32.mrb[2].mxu0 }
 0x50f   :  { %v344_v39 = vadd.f32 %v343_v38, %v272_v37  ;;  %v636_v40 = vpop.f32.mrb[3].mxu0 }
 0x511   :  { %v347_v41 = vadd.f32 %v344_v39, %v775_v9 }
 0x513   :  { %v348_v42 = vsel %vm29_vm1, %v347_v41, 0.0 }
 0x514   :  { %349 = vadd.xlane.f32.xlu1 %v348_v42 }
 0x525   :  { %368 = vrot.lane.b32.xlu1 %v365_v47, %s709_s3 }
 0x5a1   :  { %v350_v49 = vpop.xlane.xlu1 %349 }
 0x5a2   :  { %v352_v50 = vmul.f32 0.03125, %v350_v49 }
 0x5a4   :  { %v353_v51 = vsub.f32 %v347_v41, %v352_v50 }
 0x5a5   :  { %v369_v5 = vpop.permute.xlu1 %368 }
 0x5a6   :  { %v354_v52 = vmul.f32 %v353_v51, %v353_v51 }
 0x5a8   :  { %v355_v53 = vsel %vm29_vm1, %v354_v52, 0.0 }
 0x5a9   :  { %356 = vadd.xlane.f32.xlu0 %v355_v53 }
 0x5bf   :  { %688 = vrot.lane.b32.xlu0 %v687_v54, %s710_s2 }
 0x5c3   :  { %693 = vrot.lane.b32.xlu0 %v692_v55, %s709_s3 }
 0x5c7   :  { %388 = vrot.lane.b32.xlu0 %v788_v14, %s711_s30 }
 0x5cb   :  { %473 = vrot.lane.b32.xlu0 %v788_v14, %s712_s5 }
 0x636   :  { %v357_v56 = vpop.xlane.xlu0 %356 }
 0x637   :  { %v358_v57 = vmul.f32 0.03125, %v357_v56 }
 0x639   :  { %v359_v58 = vadd.f32 1e-05, %v358_v57 }
 0x63a   :  { %v689_v59 = vpop.permute.xlu0 %688 }
 0x63b   :  { %701 = vrsqrt.f32 %v359_v58  ;;  %v691_v60 = vunpack.i.h.bf16 %v689_v59  ;;  %v690_v61 = vunpack.i.l.bf16 %v689_v59 }
 0x63d   :  { %v668_v62 = vpack.c.bf16 %v691_v60, %v690_v61 }
 0x63e   :  { %v694_v63 = vpop.permute.xlu0 %693 }
 0x63f   :  { %669 = vmatpush3.bf16.msra.mxu1 %v668_v62  ;;  %v696_v0 = vunpack.i.h.bf16 %v694_v63  ;;  %v695_v1 = vunpack.i.l.bf16 %v694_v63 }
 0x641   :  { %v671_v2 = vpack.c.bf16 %v696_v0, %v695_v1 }
 0x642   :  { %v389_v8 = vpop.permute.xlu0 %388 }
 0x643   :  { %672 = vmatpush3.bf16.msra.mxu0 %v671_v2 }
 0x645   :  { %v702_v3 = vpop.eup %701 }
 0x646   :  { %v361_v4 = vmul.f32 %v702_v3, %v353_v51  ;;  %v474_v13 = vpop.permute.xlu0 %473 }
 0x648   :  { %v366_v6 = vmul.f32 %v365_v47, %v361_v4 }
 0x64a   :  { %v371_v7 = vadd.f32 %v369_v5, %v366_v6 }
 0x64c   :  { %646 = vmatmul.mubr.msk.f32.vlgmr.msra.gmra.mrb[4].mxu1 %vm29_vm1, %v371_v7 }
 0x71f   :  { %v460_v9 = vpop.f32.mrb[4].mxu1 }
 0x720   :  { %v461_v10 = vadd.f32 %v460_v9, %v389_v8  ;;  %v647_v11 = vpop.f32.mrb[5].mxu1 }
 0x722   :  { %v464_v12 = vmax.f32 %v461_v10, 0.0 }
 0x724   :  { %653 = vmatmul.mubr.msk.f32.vlgmr.msra.gmra.mrb[4].mxu0 %vm106_vm2, %v464_v12 }
 0x7f7   :  { %v545_v15 = vpop.f32.mrb[4].mxu0 }
 0x7f8   :  { %v546_v16 = vadd.f32 %v545_v15, %v474_v13  ;;  %v654_v17 = vpop.f32.mrb[5].mxu0 }
 0x7fa   :  { %v549_v18 = vadd.f32 %v546_v16, %v371_v7 }
 0x7fc   :  { %v550_v19 = vsel %vm29_vm1, %v549_v18, 0.0 }
 0x7fd   :  { %551 = vadd.xlane.f32.xlu0 %v550_v19 }
 0x813   :  { %563 = vrot.lane.b32.xlu0 %v365_v47, %s713_s6 }
 0x817   :  { %571 = vrot.lane.b32.xlu0 %v807_v34, %s712_s5 }
 0x88a   :  { %v552_v14 = vpop.xlane.xlu0 %551 }
 0x88b   :  { %v553_v20 = vmul.f32 0.03125, %v552_v14 }
 0x88d   :  { %v554_v21 = vsub.f32 %v549_v18, %v553_v20 }
 0x88e   :  { %v564_v28 = vpop.permute.xlu0 %563 }
 0x88f   :  { %v555_v22 = vmul.f32 %v554_v21, %v554_v21 }
 0x891   :  { %v556_v23 = vsel %vm29_vm1, %v555_v22, 0.0 }
 0x892   :  { %557 = vadd.xlane.f32.xlu1 %v556_v23  ;;  %v572_v33 = vpop.permute.xlu0 %571 }
 0x8a3   :  { %567 = vrot.lane.b32.xlu1 %v365_v47, %s712_s5 }
 0x91f   :  { %v558_v24 = vpop.xlane.xlu1 %557 }
 0x920   :  { %v559_v25 = vmul.f32 0.03125, %v558_v24 }
 0x922   :  { %v560_v26 = vadd.f32 1e-05, %v559_v25 }
 0x923   :  { %v568_v30 = vpop.permute.xlu1 %567 }
 0x924   :  { %703 = vrsqrt.f32 %v560_v26 }
 0x92e   :  { %v704_v27 = vpop.eup %703 }
 0x92f   :  { %v562_v29 = vmul.f32 %v704_v27, %v554_v21 }
 0x931   :  { %v566_v31 = vmul.f32 %v564_v28, %v562_v29 }
 0x933   :  { %v570_v32 = vadd.f32 %v568_v30, %v566_v31 }
 0x935   :  { %v574_v34 = vsel %vm29_vm1, %v570_v32, %v572_v33 }
 0x936   :  { %v576_v35 = vsel %vm575_vm4, %v574_v34, 0.0 }
 0x937   :  { %577 = vst [vmem:[%s844_s4] sm:$0xff] %v576_v35 }

</bundles_post_ra>
